<compile_context>
chip_gen: v7x
topology: tpu7x:2x2x1
jax: 0.10.0
libtpu: 0.0.40
codegen_flags: <defaults>
</compile_context>

<pallas_src>
import functools

import jax
import jax.numpy as jnp
from jax.experimental import pallas as pl
from jax.experimental.pallas import tpu as pltpu


def _pointer_generator_kernel(
    # inputs
    h_ref,      # (TT, H)        decoder hiddens (row tile)
    wc_ref,     # (H, TV)        vocab projection weight tile (padded, transposed)
    bc_ref,     # (1, TV)        vocab projection bias tile (pad cols & pad_idx = -inf)
    wp_ref,     # (H, 3)         pointer-switch weight (transposed)
    bp_ref,     # (1, 3)         pointer-switch bias
    sattn_ref,  # (TT, S)        source attentions (row tile)
    smap_ref,   # (S, Ds)        source attention map
    tattn_ref,  # (TT, Tn)       target attentions (row tile)
    tmap_ref,   # (Tn, Dt)       target attention map
    # outputs
    out_ref,    # (TT, V+Ds+Dt)  fused probability slab (resident across V tiles)
    pred_ref,   # (TT, 1)        argmax predictions
    # scratch
    m_scr,      # (TT, 1)        running max of vocab logits
    l_scr,      # (TT, 1)        running sum of exp(logit - running max)
    *,
    vocab_size, src_dv, tgt_dv, tv, n_v, approx,
):
    v = pl.program_id(2)
    last_v = n_v - 1

    # ---- init the online-softmax accumulators at the first vocab tile ----
    @pl.when(v == 0)
    def _init():
        m_scr[...] = jnp.full(m_scr.shape, -jnp.inf, dtype=m_scr.dtype)
        l_scr[...] = jnp.zeros(l_scr.shape, dtype=l_scr.dtype)

    h = h_ref[...]                                              # (TT, H)

    # ---- this vocab tile's logits (pad columns / pad_idx carry -inf bias) ----
    s = (jnp.dot(h, wc_ref[...], preferred_element_type=jnp.float32)
         + bc_ref[...])                                         # (TT, TV) f32

    # ---- online softmax statistics: running max + rescaled running sum ----
    m_prev = m_scr[...]
    m_new = jnp.maximum(m_prev, jnp.max(s, axis=-1, keepdims=True))
    l_scr[...] = (l_scr[...] * jnp.exp(m_prev - m_new)
                  + jnp.sum(jnp.exp(s - m_new), axis=-1, keepdims=True))
    m_scr[...] = m_new

    # ---- stash raw logits into the resident output block's vocab section ----
    # Static, predicated per-tile stores (no dynamic lane-offset addressing);
    # the padded (-inf) tail columns of the last tile are simply not written.
    for k in range(n_v):
        lo = k * tv
        hi = min(vocab_size, lo + tv)

        @pl.when(v == k)
        def _store(lo=lo, hi=hi):
            out_ref[:, lo:hi] = s[:, : hi - lo]

    # ---- finalize once every vocab tile has been accumulated ----
    @pl.when(v == last_v)
    def _finalize():
        # Pointer switch: softmax(hiddens @ Wp + bp) over 3 classes.
        # Computed once per row tile (not per vocab tile); cost ~ 3/V of the
        # vocab matmul.
        p_logits = (jnp.dot(h, wp_ref[...], preferred_element_type=jnp.float32)
                    + bp_ref[...])                              # (TT, 3)
        p_logits = p_logits - jnp.max(p_logits, axis=-1, keepdims=True)
        p_exp = jnp.exp(p_logits)
        p = p_exp * pl.reciprocal(
            jnp.sum(p_exp, axis=-1, keepdims=True), approx=approx)
        p_copy_source = p[:, 0:1]
        p_copy_target = p[:, 1:2]
        p_generate = p[:, 2:3]

        # Vocab probabilities, normalized in place and scaled by p_generate.
        scale = p_generate * pl.reciprocal(l_scr[...], approx=approx)  # (TT,1)
        raw = out_ref[:, 0:vocab_size]
        out_ref[:, 0:vocab_size] = jnp.exp(raw - m_scr[...]) * scale

        # Copy distributions (scaled attention @ indicator map).
        src = jnp.dot(sattn_ref[...] * p_copy_source, smap_ref[...],
                      preferred_element_type=jnp.float32)       # (TT, Ds)
        tgt = jnp.dot(tattn_ref[...] * p_copy_target, tmap_ref[...],
                      preferred_element_type=jnp.float32)       # (TT, Dt)
        out_ref[:, vocab_size:vocab_size + src_dv] = src
        out_ref[:, vocab_size + src_dv:vocab_size + src_dv + tgt_dv] = tgt

        # Fused argmax (predictions) with the first target-copy slot excluded,
        # matching `_probs[:, :, vocab_size + src_dv] = 0; _probs.max(2)`
        # (that column can never win since the row always has a positive prob).
        probs = out_ref[...]                                    # (TT, V+Ds+Dt)
        col = jax.lax.broadcasted_iota(jnp.int32, probs.shape, 1)
        vals = jnp.where(col == vocab_size + src_dv, -1.0, probs)
        row_max = jnp.max(vals, axis=-1, keepdims=True)
        big = jnp.iinfo(jnp.int32).max
        first_idx = jnp.min(jnp.where(vals == row_max, col, big),
                            axis=-1, keepdims=True)
        pred_ref[...] = first_idx.astype(jnp.int32)


def pointer_generator_forward(
    hiddens,                 # [B, T, H]  f32
    source_attentions,       # [B, T, S]  f32
    source_attention_maps,   # [B, S, Ds] f32
    target_attentions,       # [B, T, T]  f32
    target_attention_maps,   # [B, T, Dt] f32
    W, b,                    # vocab projection, stored [H, V] / [V]
    Wp, bp,                  # pointer switch, stored [H, 3] / [3]
    vocab_size,
    vocab_pad_idx,
    *,
    compute_dtype=jnp.float32,   # set jnp.bfloat16 on v6e/v7x to halve W traffic
    approx_reciprocal=False,     # denominators are (TT,1); approx buys ~nothing
    row_tile=None,
    vocab_tile=None,
):
    B, T, H = hiddens.shape
    S = source_attentions.shape[2]
    Ds = source_attention_maps.shape[2]
    Dt = target_attention_maps.shape[2]
    V = W.shape[1]
    assert V == vocab_size
    Tn = target_attentions.shape[2]   # == T (key/"source side" of target attn)

    # Tile sizes.  Re-derive per generation's VMEM budget (v5e/v6e 128 MiB,
    # v7x 64 MiB): resident output block = TT*(V+Ds+Dt)*4 bytes (x2 buffers),
    # pipelined weight tile = 2*H*TV*itemsize.
    TT = row_tile if row_tile is not None else (T if T <= 128 else 128)
    Tp = -(-T // TT) * TT
    TV = vocab_tile if vocab_tile is not None else (128 if V <= 1024 else 512)
    assert TV % 128 == 0
    n_v = -(-V // TV)
    Vpad = n_v * TV

    f32 = jnp.float32
    # Vocab projection padded on the vocab axis so weight tiles are lane-dense.
    # Padding columns get weight 0 / bias -inf (=> probability exactly 0), and
    # the vocab_pad_idx mask is folded into the bias (no per-step iota/where).
    Wc = jnp.zeros((H, Vpad), f32).at[:, :V].set(W.astype(f32))
    Wc = Wc.astype(compute_dtype)
    bc = jnp.full((1, Vpad), -jnp.inf, f32).at[0, :V].set(b.astype(f32))
    bc = bc.at[0, vocab_pad_idx].set(-jnp.inf)
    Wp2 = Wp.astype(compute_dtype)
    bp2 = bp.reshape(1, 3).astype(f32)

    def _pad_rows(x):
        if Tp == T:
            return x
        return jnp.pad(x, ((0, 0), (0, Tp - T), (0, 0)))

    hp = _pad_rows(hiddens).astype(compute_dtype)
    sap = _pad_rows(source_attentions).astype(f32)
    tap = _pad_rows(target_attentions).astype(f32)
    smp = source_attention_maps.astype(f32)
    tmp = target_attention_maps.astype(f32)

    Wout = V + Ds + Dt
    grid = (B, Tp // TT, n_v)

    kernel = functools.partial(
        _pointer_generator_kernel,
        vocab_size=V, src_dv=Ds, tgt_dv=Dt, tv=TV, n_v=n_v,
        approx=approx_reciprocal,
    )

    grid_spec = pltpu.PrefetchScalarGridSpec(
        num_scalar_prefetch=0,
        grid=grid,
        in_specs=[
            pl.BlockSpec((pl.Squeezed(), TT, H),  lambda b, t, v: (b, t, 0)),
            pl.BlockSpec((H, TV),                 lambda b, t, v: (0, v)),
            pl.BlockSpec((1, TV),                 lambda b, t, v: (0, v)),
            pl.BlockSpec((H, 3),                  lambda b, t, v: (0, 0)),
            pl.BlockSpec((1, 3),                  lambda b, t, v: (0, 0)),
            pl.BlockSpec((pl.Squeezed(), TT, S),  lambda b, t, v: (b, t, 0)),
            pl.BlockSpec((pl.Squeezed(), S, Ds),  lambda b, t, v: (b, 0, 0)),
            pl.BlockSpec((pl.Squeezed(), TT, Tn), lambda b, t, v: (b, t, 0)),
            pl.BlockSpec((pl.Squeezed(), Tn, Dt), lambda b, t, v: (b, 0, 0)),
        ],
        out_specs=[
            pl.BlockSpec((pl.Squeezed(), TT, Wout), lambda b, t, v: (b, t, 0)),
            pl.BlockSpec((pl.Squeezed(), TT, 1),    lambda b, t, v: (b, t, 0)),
        ],
        scratch_shapes=[
            pltpu.VMEM((TT, 1), jnp.float32),   # running max
            pltpu.VMEM((TT, 1), jnp.float32),   # running sum
        ],
    )

    itemsize = jnp.dtype(compute_dtype).itemsize
    flops = 2 * B * Tp * H * (Vpad + 3) + 2 * B * Tp * (S * Ds + Tn * Dt)
    transcendentals = B * Tp * (Vpad + V + 3)
    bytes_accessed = (
        hp.size * itemsize
        + (sap.size + tap.size + smp.size + tmp.size) * 4
        + B * (Tp // TT) * (Wc.size * itemsize + bc.size * 4)
        + Wp2.size * itemsize + bp2.size * 4
        + B * Tp * Wout * 4 + B * Tp * 4
    )
    cost = pl.CostEstimate(
        flops=flops, transcendentals=transcendentals,
        bytes_accessed=bytes_accessed)

    probs, preds = pl.pallas_call(
        kernel,
        out_shape=(
            jax.ShapeDtypeStruct((B, Tp, Wout), jnp.float32),
            jax.ShapeDtypeStruct((B, Tp, 1), jnp.int32),
        ),
        grid_spec=grid_spec,
        compiler_params=pltpu.CompilerParams(
            dimension_semantics=("parallel", "parallel", "arbitrary"),
            vmem_limit_bytes=64 * 1024 * 1024,
        ),
        cost_estimate=cost,
    )(hp, Wc, bc, Wp2, bp2, sap, smp, tap, tmp)

    predictions = preds[:, :, 0]
    if Tp != T:
        probs = probs[:, :T, :]
        predictions = predictions[:, :T]

    # TODO(synk): invalid_indexes (python-dict driven zeroing of vocab /
    # source-copy columns) is host-side control flow and is left out.
    return dict(
        probs=probs,
        predictions=predictions,
        source_dynamic_vocab_size=Ds,
        target_dynamic_vocab_size=Dt,
    )


def _reference_forward(hiddens, sattn, smap, tattn, tmap, W, b, Wp, bp,
                       vocab_size, vocab_pad_idx):
    """Pure-JAX reference mirroring the PyTorch forward."""
    B, T, H = hiddens.shape
    h = hiddens.reshape(B * T, H)
    p = jax.nn.softmax(h @ Wp + bp, axis=1)
    p_cs = p[:, 0].reshape(B, T, 1)
    p_ct = p[:, 1].reshape(B, T, 1)
    p_gen = p[:, 2].reshape(B, T, 1)
    scores = h @ W + b
    scores = scores.at[:, vocab_pad_idx].set(-jnp.inf)
    vocab_probs = jax.nn.softmax(scores.reshape(B, T, -1), axis=-1)
    scaled_vocab = vocab_probs * p_gen
    scaled_src = jnp.einsum("bts,bsd->btd", sattn * p_cs, smap)
    scaled_tgt = jnp.einsum("btu,bud->btd", tattn * p_ct, tmap)
    probs = jnp.concatenate([scaled_vocab, scaled_src, scaled_tgt], axis=2)
    _probs = probs.at[:, :, vocab_size + smap.shape[2]].set(0.0)
    preds = jnp.argmax(_probs, axis=2)
    return probs, preds


def _run_case(name, key, *, B, T, H, S, V, Ds, Dt, vocab_pad_idx, **kw):
    keys = jax.random.split(key, 9)
    hiddens = jax.random.normal(keys[0], (B, T, H), dtype=jnp.float32)
    source_attentions = jax.nn.softmax(
        jax.random.normal(keys[1], (B, T, S), dtype=jnp.float32), axis=-1)
    target_attentions = jax.nn.softmax(
        jax.random.normal(keys[2], (B, T, T), dtype=jnp.float32), axis=-1)
    src_idx = jax.random.randint(keys[3], (B, S), 0, Ds)
    tgt_idx = jax.random.randint(keys[4], (B, T), 0, Dt)
    source_attention_maps = jax.nn.one_hot(src_idx, Ds, dtype=jnp.float32)
    target_attention_maps = jax.nn.one_hot(tgt_idx, Dt, dtype=jnp.float32)
    W = jax.random.normal(keys[5], (H, V), dtype=jnp.float32) * 0.1
    b = jax.random.normal(keys[6], (V,), dtype=jnp.float32) * 0.1
    Wp = jax.random.normal(keys[7], (H, 3), dtype=jnp.float32) * 0.1
    bp = jax.random.normal(keys[8], (3,), dtype=jnp.float32) * 0.1

    out = pointer_generator_forward(
        hiddens, source_attentions, source_attention_maps,
        target_attentions, target_attention_maps,
        W, b, Wp, bp, V, vocab_pad_idx, **kw)
    jax.block_until_ready(out["probs"])
    jax.block_until_ready(out["predictions"])

    ref_probs, ref_preds = _reference_forward(
        hiddens, source_attentions, source_attention_maps,
        target_attentions, target_attention_maps,
        W, b, Wp, bp, V, vocab_pad_idx)
    assert out["probs"].shape == ref_probs.shape, name
    assert jnp.allclose(out["probs"], ref_probs, atol=1e-5, rtol=1e-5), name
    assert jnp.array_equal(out["predictions"], ref_preds), name


if __name__ == "__main__":
    key = jax.random.PRNGKey(0)
    k1, k2 = jax.random.split(key)

    # Case 1: single vocab tile (n_v=1), row tile == T.
    _run_case("small", k1, B=2, T=8, H=32, S=16, V=32, Ds=16, Dt=8,
              vocab_pad_idx=0)

    # Case 2: multi-tile online softmax over the vocab (n_v=2, partial last
    # tile), row tiling with padding (T=12 -> Tp=16), nonzero pad index.
    _run_case("tiled", k2, B=2, T=12, H=32, S=16, V=200, Ds=24, Dt=12,
              vocab_pad_idx=1, row_tile=8, vocab_tile=128)

    print("KERNEL_OK")
</pallas_src>

<mosaic_0001>
module attributes {stable_mosaic.version = 11 : i64} {
  func.func @_pointer_generator_kernel(%arg0: i32, %arg1: i32, %arg2: i32, %arg3: memref<1x8x32xf32, #tpu.memory_space<vmem>>, %arg4: memref<32x128xf32, #tpu.memory_space<vmem>>, %arg5: memref<1x128xf32, #tpu.memory_space<vmem>>, %arg6: memref<32x3xf32, #tpu.memory_space<vmem>>, %arg7: memref<1x3xf32, #tpu.memory_space<vmem>>, %arg8: memref<1x8x16xf32, #tpu.memory_space<vmem>>, %arg9: memref<1x16x16xf32, #tpu.memory_space<vmem>>, %arg10: memref<1x8x8xf32, #tpu.memory_space<vmem>>, %arg11: memref<1x8x8xf32, #tpu.memory_space<vmem>>, %arg12: memref<1x8x56xf32, #tpu.memory_space<vmem>>, %arg13: memref<1x8x1xi32, #tpu.memory_space<vmem>>, %arg14: memref<8x1xf32, #tpu.memory_space<vmem>>, %arg15: memref<8x1xf32, #tpu.memory_space<vmem>>) attributes {dimension_semantics = [#tpu.dimension_semantics<parallel>, #tpu.dimension_semantics<parallel>, #tpu.dimension_semantics<arbitrary>], iteration_bounds = array<i64: 2, 1, 1>, scalar_prefetch = 0 : i64, scratch_operands = 2 : i64, tpu.core_type = #tpu.core_type<tc>, window_params = [{transform_indices = @transform_0, window_bounds = array<i64: 1, 8, 32>}, {transform_indices = @transform_1, window_bounds = array<i64: 32, 128>}, {transform_indices = @transform_2, window_bounds = array<i64: 1, 128>}, {pipeline_mode = #tpu.pipeline_mode<synchronous>, transform_indices = @transform_3, window_bounds = array<i64: 32, 3>}, {pipeline_mode = #tpu.pipeline_mode<synchronous>, transform_indices = @transform_4, window_bounds = array<i64: 1, 3>}, {transform_indices = @transform_5, window_bounds = array<i64: 1, 8, 16>}, {transform_indices = @transform_6, window_bounds = array<i64: 1, 16, 16>}, {transform_indices = @transform_7, window_bounds = array<i64: 1, 8, 8>}, {transform_indices = @transform_8, window_bounds = array<i64: 1, 8, 8>}, {transform_indices = @transform_9, window_bounds = array<i64: 1, 8, 56>}, {transform_indices = @transform_10, window_bounds = array<i64: 1, 8, 1>}]} {
    %c0_i32 = arith.constant 0 : i32
    %0 = arith.cmpi eq, %arg2, %c0_i32 : i32
    %1 = arith.extui %0 : i1 to i32
    %c0_i32_0 = arith.constant 0 : i32
    %2 = arith.cmpi ne, %1, %c0_i32_0 : i32
    scf.if %2 {
      %cst_21 = arith.constant 0xFF800000 : f32
      %32 = vector.broadcast %cst_21 : f32 to vector<8x1xf32>
      %c0_22 = arith.constant 0 : index
      %c0_23 = arith.constant 0 : index
      %33 = vector.load %arg14[%c0_22, %c0_23] : memref<8x1xf32, #tpu.memory_space<vmem>>, vector<8x1xf32>
      tpu.vector_store %arg14[%c0_22, %c0_23], %32 {strides = array<i32>} : memref<8x1xf32, #tpu.memory_space<vmem>>, vector<8x1xf32>,
      %cst_24 = arith.constant 0.000000e+00 : f32
      %34 = vector.broadcast %cst_24 : f32 to vector<8x1xf32>
      %c0_25 = arith.constant 0 : index
      %c0_26 = arith.constant 0 : index
      %35 = vector.load %arg15[%c0_25, %c0_26] : memref<8x1xf32, #tpu.memory_space<vmem>>, vector<8x1xf32>
      tpu.vector_store %arg15[%c0_25, %c0_26], %34 {strides = array<i32>} : memref<8x1xf32, #tpu.memory_space<vmem>>, vector<8x1xf32>,
    } else {
    }
    %c0 = arith.constant 0 : index
    %c0_1 = arith.constant 0 : index
    %c0_2 = arith.constant 0 : index
    %3 = vector.load %arg3[%c0, %c0_1, %c0_2] : memref<1x8x32xf32, #tpu.memory_space<vmem>>, vector<1x8x32xf32>
    %4 = vector.shape_cast %3 : vector<1x8x32xf32> to vector<8x32xf32>
    %c0_3 = arith.constant 0 : index
    %c0_4 = arith.constant 0 : index
    %5 = vector.load %arg4[%c0_3, %c0_4] : memref<32x128xf32, #tpu.memory_space<vmem>>, vector<32x128xf32>
    %cst = arith.constant dense<0.000000e+00> : vector<8x128xf32>
    %6 = tpu.matmul %4, %5, %cst {dimension_numbers = #tpu.dot_dimension_numbers<[1], [0], [0], [1], [0, 0, 1, 1], [], []>} : vector<8x32xf32>, vector<32x128xf32>, vector<8x128xf32> -> vector<8x128xf32>
    %c0_5 = arith.constant 0 : index
    %c0_6 = arith.constant 0 : index
    %7 = vector.load %arg5[%c0_5, %c0_6] : memref<1x128xf32, #tpu.memory_space<vmem>>, vector<1x128xf32>
    %8 = vector.broadcast %7 : vector<1x128xf32> to vector<8x128xf32>
    %9 = arith.addf %6, %8 : vector<8x128xf32>
    %c0_7 = arith.constant 0 : index
    %c0_8 = arith.constant 0 : index
    %10 = vector.load %arg14[%c0_7, %c0_8] : memref<8x1xf32, #tpu.memory_space<vmem>>, vector<8x1xf32>
    %cst_9 = arith.constant dense<0xFF800000> : vector<8xf32>
    %11 = vector.multi_reduction <maximumf>, %9, %cst_9 [1] : vector<8x128xf32> to vector<8xf32>
    %12 = vector.shape_cast %11 : vector<8xf32> to vector<8x1xf32>
    %13 = arith.maximumf %10, %12 : vector<8x1xf32>
    %c0_10 = arith.constant 0 : index
    %c0_11 = arith.constant 0 : index
    %14 = vector.load %arg15[%c0_10, %c0_11] : memref<8x1xf32, #tpu.memory_space<vmem>>, vector<8x1xf32>
    %15 = arith.subf %10, %13 : vector<8x1xf32>
    %16 = math.exp %15 : vector<8x1xf32>
    %17 = arith.mulf %14, %16 : vector<8x1xf32>
    %18 = vector.broadcast %13 : vector<8x1xf32> to vector<8x128xf32>
    %19 = arith.subf %9, %18 : vector<8x128xf32>
    %20 = math.exp %19 : vector<8x128xf32>
    %cst_12 = arith.constant dense<0.000000e+00> : vector<8xf32>
    %21 = vector.multi_reduction <add>, %20, %cst_12 [1] : vector<8x128xf32> to vector<8xf32>
    %22 = vector.shape_cast %21 : vector<8xf32> to vector<8x1xf32>
    %23 = arith.addf %17, %22 : vector<8x1xf32>
    %c0_13 = arith.constant 0 : index
    %c0_14 = arith.constant 0 : index
    %24 = vector.load %arg15[%c0_13, %c0_14] : memref<8x1xf32, #tpu.memory_space<vmem>>, vector<8x1xf32>
    tpu.vector_store %arg15[%c0_13, %c0_14], %23 {strides = array<i32>} : memref<8x1xf32, #tpu.memory_space<vmem>>, vector<8x1xf32>,
    %c0_15 = arith.constant 0 : index
    %c0_16 = arith.constant 0 : index
    %25 = vector.load %arg14[%c0_15, %c0_16] : memref<8x1xf32, #tpu.memory_space<vmem>>, vector<8x1xf32>
    tpu.vector_store %arg14[%c0_15, %c0_16], %13 {strides = array<i32>} : memref<8x1xf32, #tpu.memory_space<vmem>>, vector<8x1xf32>,
    %c0_i32_17 = arith.constant 0 : i32
    %26 = arith.cmpi eq, %arg2, %c0_i32_17 : i32
    %27 = arith.extui %26 : i1 to i32
    %c0_i32_18 = arith.constant 0 : i32
    %28 = arith.cmpi ne, %27, %c0_i32_18 : i32
    scf.if %28 {
      %32 = vector.extract_strided_slice %9 {offsets = [0, 0], sizes = [8, 32], strides = [1, 1]} : vector<8x128xf32> to vector<8x32xf32>
      %c0_21 = arith.constant 0 : index
      %c0_22 = arith.constant 0 : index
      %c0_23 = arith.constant 0 : index
      %33 = vector.load %arg12[%c0_21, %c0_22, %c0_23] : memref<1x8x56xf32, #tpu.memory_space<vmem>>, vector<1x8x32xf32>
      %34 = vector.shape_cast %33 : vector<1x8x32xf32> to vector<8x32xf32>
      %35 = vector.shape_cast %32 : vector<8x32xf32> to vector<1x8x32xf32>
      tpu.vector_store %arg12[%c0_21, %c0_22, %c0_23], %35 {strides = array<i32>} : memref<1x8x56xf32, #tpu.memory_space<vmem>>, vector<1x8x32xf32>,
    } else {
    }
    %c0_i32_19 = arith.constant 0 : i32
    %29 = arith.cmpi eq, %arg2, %c0_i32_19 : i32
    %30 = arith.extui %29 : i1 to i32
    %c0_i32_20 = arith.constant 0 : i32
    %31 = arith.cmpi ne, %30, %c0_i32_20 : i32
    scf.if %31 {
      %c0_21 = arith.constant 0 : index
      %c0_22 = arith.constant 0 : index
      %32 = vector.load %arg6[%c0_21, %c0_22] : memref<32x3xf32, #tpu.memory_space<vmem>>, vector<32x3xf32>
      %cst_23 = arith.constant dense<0.000000e+00> : vector<8x3xf32>
      %33 = tpu.matmul %4, %32, %cst_23 {dimension_numbers = #tpu.dot_dimension_numbers<[1], [0], [0], [1], [0, 0, 1, 1], [], []>} : vector<8x32xf32>, vector<32x3xf32>, vector<8x3xf32> -> vector<8x3xf32>
      %c0_24 = arith.constant 0 : index
      %c0_25 = arith.constant 0 : index
      %34 = vector.load %arg7[%c0_24, %c0_25] : memref<1x3xf32, #tpu.memory_space<vmem>>, vector<1x3xf32>
      %35 = vector.broadcast %34 : vector<1x3xf32> to vector<8x3xf32>
      %36 = arith.addf %33, %35 : vector<8x3xf32>
      %cst_26 = arith.constant dense<0xFF800000> : vector<8xf32>
      %37 = vector.multi_reduction <maximumf>, %36, %cst_26 [1] : vector<8x3xf32> to vector<8xf32>
      %38 = vector.shape_cast %37 : vector<8xf32> to vector<8x1xf32>
      %39 = vector.broadcast %38 : vector<8x1xf32> to vector<8x3xf32>
      %40 = arith.subf %36, %39 : vector<8x3xf32>
      %41 = math.exp %40 : vector<8x3xf32>
      %cst_27 = arith.constant dense<0.000000e+00> : vector<8xf32>
      %42 = vector.multi_reduction <add>, %41, %cst_27 [1] : vector<8x3xf32> to vector<8xf32>
      %43 = vector.shape_cast %42 : vector<8xf32> to vector<8x1xf32>
      %44 = tpu.reciprocal %43 : vector<8x1xf32> -> vector<8x1xf32>
      %45 = vector.broadcast %44 : vector<8x1xf32> to vector<8x3xf32>
      %46 = arith.mulf %41, %45 : vector<8x3xf32>
      %47 = vector.extract_strided_slice %46 {offsets = [0, 0], sizes = [8, 1], strides = [1, 1]} : vector<8x3xf32> to vector<8x1xf32>
      %48 = vector.extract_strided_slice %46 {offsets = [0, 1], sizes = [8, 1], strides = [1, 1]} : vector<8x3xf32> to vector<8x1xf32>
      %49 = vector.extract_strided_slice %46 {offsets = [0, 2], sizes = [8, 1], strides = [1, 1]} : vector<8x3xf32> to vector<8x1xf32>
      %c0_28 = arith.constant 0 : index
      %c0_29 = arith.constant 0 : index
      %50 = vector.load %arg15[%c0_28, %c0_29] : memref<8x1xf32, #tpu.memory_space<vmem>>, vector<8x1xf32>
      %51 = tpu.reciprocal %50 : vector<8x1xf32> -> vector<8x1xf32>
      %52 = arith.mulf %49, %51 : vector<8x1xf32>
      %c0_30 = arith.constant 0 : index
      %c0_31 = arith.constant 0 : index
      %c0_32 = arith.constant 0 : index
      %53 = vector.load %arg12[%c0_30, %c0_31, %c0_32] : memref<1x8x56xf32, #tpu.memory_space<vmem>>, vector<1x8x32xf32>
      %54 = vector.shape_cast %53 : vector<1x8x32xf32> to vector<8x32xf32>
      %c0_33 = arith.constant 0 : index
      %c0_34 = arith.constant 0 : index
      %55 = vector.load %arg14[%c0_33, %c0_34] : memref<8x1xf32, #tpu.memory_space<vmem>>, vector<8x1xf32>
      %56 = vector.broadcast %55 : vector<8x1xf32> to vector<8x32xf32>
      %57 = arith.subf %54, %56 : vector<8x32xf32>
      %58 = math.exp %57 : vector<8x32xf32>
      %59 = vector.broadcast %52 : vector<8x1xf32> to vector<8x32xf32>
      %60 = arith.mulf %58, %59 : vector<8x32xf32>
      %c0_35 = arith.constant 0 : index
      %c0_36 = arith.constant 0 : index
      %c0_37 = arith.constant 0 : index
      %61 = vector.load %arg12[%c0_35, %c0_36, %c0_37] : memref<1x8x56xf32, #tpu.memory_space<vmem>>, vector<1x8x32xf32>
      %62 = vector.shape_cast %61 : vector<1x8x32xf32> to vector<8x32xf32>
      %63 = vector.shape_cast %60 : vector<8x32xf32> to vector<1x8x32xf32>
      tpu.vector_store %arg12[%c0_35, %c0_36, %c0_37], %63 {strides = array<i32>} : memref<1x8x56xf32, #tpu.memory_space<vmem>>, vector<1x8x32xf32>,
      %c0_38 = arith.constant 0 : index
      %c0_39 = arith.constant 0 : index
      %c0_40 = arith.constant 0 : index
      %64 = vector.load %arg8[%c0_38, %c0_39, %c0_40] : memref<1x8x16xf32, #tpu.memory_space<vmem>>, vector<1x8x16xf32>
      %65 = vector.shape_cast %64 : vector<1x8x16xf32> to vector<8x16xf32>
      %66 = vector.broadcast %47 : vector<8x1xf32> to vector<8x16xf32>
      %67 = arith.mulf %65, %66 : vector<8x16xf32>
      %c0_41 = arith.constant 0 : index
      %c0_42 = arith.constant 0 : index
      %c0_43 = arith.constant 0 : index
      %68 = vector.load %arg9[%c0_41, %c0_42, %c0_43] : memref<1x16x16xf32, #tpu.memory_space<vmem>>, vector<1x16x16xf32>
      %69 = vector.shape_cast %68 : vector<1x16x16xf32> to vector<16x16xf32>
      %cst_44 = arith.constant dense<0.000000e+00> : vector<8x16xf32>
      %70 = tpu.matmul %67, %69, %cst_44 {dimension_numbers = #tpu.dot_dimension_numbers<[1], [0], [0], [1], [0, 0, 1, 1], [], []>} : vector<8x16xf32>, vector<16x16xf32>, vector<8x16xf32> -> vector<8x16xf32>
      %c0_45 = arith.constant 0 : index
      %c0_46 = arith.constant 0 : index
      %c0_47 = arith.constant 0 : index
      %71 = vector.load %arg10[%c0_45, %c0_46, %c0_47] : memref<1x8x8xf32, #tpu.memory_space<vmem>>, vector<1x8x8xf32>
      %72 = vector.shape_cast %71 : vector<1x8x8xf32> to vector<8x8xf32>
      %73 = vector.broadcast %48 : vector<8x1xf32> to vector<8x8xf32>
      %74 = arith.mulf %72, %73 : vector<8x8xf32>
      %c0_48 = arith.constant 0 : index
      %c0_49 = arith.constant 0 : index
      %c0_50 = arith.constant 0 : index
      %75 = vector.load %arg11[%c0_48, %c0_49, %c0_50] : memref<1x8x8xf32, #tpu.memory_space<vmem>>, vector<1x8x8xf32>
      %76 = vector.shape_cast %75 : vector<1x8x8xf32> to vector<8x8xf32>
      %cst_51 = arith.constant dense<0.000000e+00> : vector<8x8xf32>
      %77 = tpu.matmul %74, %76, %cst_51 {dimension_numbers = #tpu.dot_dimension_numbers<[1], [0], [0], [1], [0, 0, 1, 1], [], []>} : vector<8x8xf32>, vector<8x8xf32>, vector<8x8xf32> -> vector<8x8xf32>
      %c0_52 = arith.constant 0 : index
      %c0_53 = arith.constant 0 : index
      %c32 = arith.constant 32 : index
      %78 = vector.load %arg12[%c0_52, %c0_53, %c32] : memref<1x8x56xf32, #tpu.memory_space<vmem>>, vector<1x8x16xf32>
      %79 = vector.shape_cast %78 : vector<1x8x16xf32> to vector<8x16xf32>
      %80 = vector.shape_cast %70 : vector<8x16xf32> to vector<1x8x16xf32>
      tpu.vector_store %arg12[%c0_52, %c0_53, %c32], %80 {strides = array<i32>} : memref<1x8x56xf32, #tpu.memory_space<vmem>>, vector<1x8x16xf32>,
      %c0_54 = arith.constant 0 : index
      %c0_55 = arith.constant 0 : index
      %c48 = arith.constant 48 : index
      %81 = vector.load %arg12[%c0_54, %c0_55, %c48] : memref<1x8x56xf32, #tpu.memory_space<vmem>>, vector<1x8x8xf32>
      %82 = vector.shape_cast %81 : vector<1x8x8xf32> to vector<8x8xf32>
      %83 = vector.shape_cast %77 : vector<8x8xf32> to vector<1x8x8xf32>
      tpu.vector_store %arg12[%c0_54, %c0_55, %c48], %83 {strides = array<i32>} : memref<1x8x56xf32, #tpu.memory_space<vmem>>, vector<1x8x8xf32>,
      %c0_56 = arith.constant 0 : index
      %c0_57 = arith.constant 0 : index
      %c0_58 = arith.constant 0 : index
      %84 = vector.load %arg12[%c0_56, %c0_57, %c0_58] : memref<1x8x56xf32, #tpu.memory_space<vmem>>, vector<1x8x56xf32>
      %85 = vector.shape_cast %84 : vector<1x8x56xf32> to vector<8x56xf32>
      %86 = tpu.iota {dimensions = array<i32: 1>} : vector<8x56xi32>
      %c48_i32 = arith.constant 48 : i32
      %87 = vector.broadcast %c48_i32 : i32 to vector<8x56xi32>
      %88 = arith.cmpi eq, %86, %87 : vector<8x56xi32>
      %cst_59 = arith.constant -1.000000e+00 : f32
      %89 = vector.broadcast %cst_59 : f32 to vector<8x56xf32>
      %90 = arith.select %88, %89, %85 : vector<8x56xi1>, vector<8x56xf32>
      %cst_60 = arith.constant dense<0xFF800000> : vector<8xf32>
      %91 = vector.multi_reduction <maximumf>, %90, %cst_60 [1] : vector<8x56xf32> to vector<8xf32>
      %92 = vector.shape_cast %91 : vector<8xf32> to vector<8x1xf32>
      %93 = vector.broadcast %92 : vector<8x1xf32> to vector<8x56xf32>
      %94 = arith.cmpf oeq, %90, %93 : vector<8x56xf32>
      %c2147483647_i32 = arith.constant 2147483647 : i32
      %95 = vector.broadcast %c2147483647_i32 : i32 to vector<8x56xi32>
      %96 = arith.select %94, %86, %95 : vector<8x56xi1>, vector<8x56xi32>
      %cst_61 = arith.constant dense<2147483647> : vector<8xi32>
      %97 = vector.multi_reduction <minsi>, %96, %cst_61 [1] : vector<8x56xi32> to vector<8xi32>
      %98 = vector.shape_cast %97 : vector<8xi32> to vector<8x1xi32>
      %c0_62 = arith.constant 0 : index
      %c0_63 = arith.constant 0 : index
      %c0_64 = arith.constant 0 : index
      %99 = vector.load %arg13[%c0_62, %c0_63, %c0_64] : memref<1x8x1xi32, #tpu.memory_space<vmem>>, vector<1x8x1xi32>
      %100 = vector.shape_cast %99 : vector<1x8x1xi32> to vector<8x1xi32>
      %101 = vector.shape_cast %98 : vector<8x1xi32> to vector<1x8x1xi32>
      tpu.vector_store %arg13[%c0_62, %c0_63, %c0_64], %101 {strides = array<i32>} : memref<1x8x1xi32, #tpu.memory_space<vmem>>, vector<1x8x1xi32>,
    } else {
    }
    return
  }
  func.func @transform_0(%arg0: i32, %arg1: i32, %arg2: i32) -> (i32, i32, i32) {
    %c0_i32 = arith.constant 0 : i32
    %c0_i32_0 = arith.constant 0 : i32
    return %arg0, %arg1, %c0_i32 : i32, i32, i32
  }
  func.func @transform_1(%arg0: i32, %arg1: i32, %arg2: i32) -> (i32, i32) {
    %c0_i32 = arith.constant 0 : i32
    %c0_i32_0 = arith.constant 0 : i32
    return %c0_i32, %arg2 : i32, i32
  }
  func.func @transform_2(%arg0: i32, %arg1: i32, %arg2: i32) -> (i32, i32) {
    %c0_i32 = arith.constant 0 : i32
    %c0_i32_0 = arith.constant 0 : i32
    return %c0_i32, %arg2 : i32, i32
  }
  func.func @transform_3(%arg0: i32, %arg1: i32, %arg2: i32) -> (i32, i32) {
    %c0_i32 = arith.constant 0 : i32
    %c0_i32_0 = arith.constant 0 : i32
    %c0_i32_1 = arith.constant 0 : i32
    return %c0_i32, %c0_i32_0 : i32, i32
  }
  func.func @transform_4(%arg0: i32, %arg1: i32, %arg2: i32) -> (i32, i32) {
    %c0_i32 = arith.constant 0 : i32
    %c0_i32_0 = arith.constant 0 : i32
    %c0_i32_1 = arith.constant 0 : i32
    return %c0_i32, %c0_i32_0 : i32, i32
  }
  func.func @transform_5(%arg0: i32, %arg1: i32, %arg2: i32) -> (i32, i32, i32) {
    %c0_i32 = arith.constant 0 : i32
    %c0_i32_0 = arith.constant 0 : i32
    return %arg0, %arg1, %c0_i32 : i32, i32, i32
  }
  func.func @transform_6(%arg0: i32, %arg1: i32, %arg2: i32) -> (i32, i32, i32) {
    %c0_i32 = arith.constant 0 : i32
    %c0_i32_0 = arith.constant 0 : i32
    %c0_i32_1 = arith.constant 0 : i32
    return %arg0, %c0_i32, %c0_i32_0 : i32, i32, i32
  }
  func.func @transform_7(%arg0: i32, %arg1: i32, %arg2: i32) -> (i32, i32, i32) {
    %c0_i32 = arith.constant 0 : i32
    %c0_i32_0 = arith.constant 0 : i32
    return %arg0, %arg1, %c0_i32 : i32, i32, i32
  }
  func.func @transform_8(%arg0: i32, %arg1: i32, %arg2: i32) -> (i32, i32, i32) {
    %c0_i32 = arith.constant 0 : i32
    %c0_i32_0 = arith.constant 0 : i32
    %c0_i32_1 = arith.constant 0 : i32
    return %arg0, %c0_i32, %c0_i32_0 : i32, i32, i32
  }
  func.func @transform_9(%arg0: i32, %arg1: i32, %arg2: i32) -> (i32, i32, i32) {
    %c0_i32 = arith.constant 0 : i32
    %c0_i32_0 = arith.constant 0 : i32
    return %arg0, %arg1, %c0_i32 : i32, i32, i32
  }
  func.func @transform_10(%arg0: i32, %arg1: i32, %arg2: i32) -> (i32, i32, i32) {
    %c0_i32 = arith.constant 0 : i32
    %c0_i32_0 = arith.constant 0 : i32
    return %arg0, %arg1, %c0_i32 : i32, i32, i32
  }
}

</mosaic_0001>

<bundles_post_ra>
// kernel: tpu_custom_call.1
= control target key start
LH: loop header
LB: loop body
LE: loop exit
PB: predicated region body
PF: predicated region fallthrough
CT: control target
= control target key end

     0   :  { %s2604_s0 = inlined_call_operand.hbm [shape: f32[2,8,32], index: 0, kind: input, shape index: {}]   ;;  %s2605_s1 = inlined_call_operand.hbm [shape: f32[32,128], index: 1, kind: input, shape index: {}]   ;;  %s2606_s2 = inlined_call_operand.hbm [shape: f32[1,128], index: 2, kind: input, shape index: {}]   ;;  %s2607_s3 = inlined_call_operand.hbm [shape: f32[32,3], index: 3, kind: input, shape index: {}]   ;;  %s2608_s4 = inlined_call_operand.hbm [shape: f32[1,3], index: 4, kind: input, shape index: {}]   ;;  %s2609_s5 = inlined_call_operand.hbm [shape: f32[2,8,16], index: 5, kind: input, shape index: {}]   ;;  %s2610_s6 = inlined_call_operand.hbm [shape: f32[2,16,16], index: 6, kind: input, shape index: {}]   ;;  %s2611_s7 = inlined_call_operand.hbm [shape: f32[2,8,8], index: 7, kind: input, shape index: {}]   ;;  %s2612_s8 = inlined_call_operand.hbm [shape: f32[2,8,8], index: 8, kind: input, shape index: {}]   ;;  %s2613_s9 = inlined_call_operand.hbm [shape: f32[2,8,56], index: 9, kind: output, shape index: {0}]   ;;  %s2614_s10 = inlined_call_operand.hbm [shape: s32[2,8,1], index: 10, kind: output, shape index: {1}]  }
   0x1   :  { %2644 = sst [smem:[#allocation38_spill]] %s2605_s1 }
   0x2   :  { %2645 = sst [smem:[#allocation39_spill]] %s2607_s3 }
   0x3   :  { %2646 = sst [smem:[#allocation40_spill]] %s2609_s5 }
   0x4   :  { %2647 = sst [smem:[#allocation41_spill]] %s2613_s9 }
   0x5   :  { %2648 = sst [smem:[#allocation42_spill]] %s2614_s10 }
   0x6   :  { %16 = vsyncpa [#allocation5], 0 }
   0x7   :  { %18 = vsyncpa [#allocation5 + $0x1], 0 }
   0x8   :  { %19 = vsyncpa [#allocation8], 0 }
   0x9   :  { %20 = vsyncpa [#allocation11], 0 }
   0xa   :  { %21 = vsyncpa [#allocation14], 0 }
   0xb   :  { %23 = vsyncpa [#allocation14 + $0x1], 0 }
   0xc   :  { %24 = vsyncpa [#allocation17], 0 }
   0xd   :  { %26 = vsyncpa [#allocation17 + $0x1], 0 }
   0xe   :  { %27 = vsyncpa [#allocation6], 0 }
   0xf   :  { %29 = vsyncpa [#allocation6 + $0x1], 0 }
  0x10   :  { %30 = vsyncpa [#allocation21], 0 }
  0x11   :  { %32 = vsyncpa [#allocation21 + $0x1], 0  ;;  %s2088_s13 = smov 0   ;;  %s2090_s14 = smov 0  }
  0x12   :  { %s2092_s15 = smov 0   ;;  %s2094_s16 = smov 0  }
  0x13   :  { %s2096_s17 = smov 0   ;;  %s2098_s18 = smov 0  }
  0x14 LB: > { %2649 = sst [smem:[#allocation29_spill]] %s1988_s13  ;;  %s2119_s19 = sadd.s32 4294967295, %s2008_s18   ;;  %s2008_s18 = sphi %s2098_s18, %s38_s18   ;;  %s2004_s17 = sphi %s2096_s17, %s2701_s17   ;;  %s2000_s16 = sphi %s2094_s16, %s2700_s16   ;;  %s1996_s15 = sphi %s2092_s15, %s2696_s15   ;;  %s1992_s14 = sphi %s2090_s14, %s2699_s14   ;;  %s1988_s13 = sphi %s2088_s13, %s2698_s13  }
  0x15   : > { %2650 = sst [smem:[#allocation30_spill]] %s1996_s15  ;;  %s1352_s20 = sadd.s32 4294967294, %s2008_s18  }
  0x16   : > { %2651 = sst [smem:[#allocation31_spill]] %s2000_s16  ;;  %p79_p0 = scmp.ne.s32.totalorder %s1992_s14, %s1988_s13 }
  0x17   : > { %2652 = sst [smem:[#allocation32_spill]] %s2119_s19  ;;  %p2616_p1 = scmp.eq.s32.totalorder %s2119_s19, 0 }
  0x18   : > { %p313_p3 = scmp.eq.s32.totalorder %s1352_s20, 1  ;;  %p1353_p5 = scmp.ge.s32.totalorder %s2008_s18, 1 }
  0x19   : > { %p2128_p4 = por %p2616_p1, %p79_p0  ;;  %p348_p7 = scmp.lt.s32.totalorder %s2008_s18, 3 }
  0x1a   : > { %p2133_p6 = por %p313_p3, %p79_p0  ;;  %s2010_s24 = smov [#allocation7]  }
  0x1b   : > { %s2653_s21 = scalar_select %p2128_p4, 1, 0 }
  0x1c   : > { %s2655_s22 = scalar_select %p2133_p6, 1, 0 }
  0x1d   : > { %2654 = sst [smem:[#allocation33_spill]] %s2653_s21  ;;  %p2138_p8 = pnand %p1353_p5, %p348_p7 }
  0x1e   : > { %2656 = sst [smem:[#allocation34_spill]] %s2655_s22  ;;  %s362_s25 = sshll.u32 %s2010_s24, 4  ;;  %s2142_s25 = int_to_ptr.vmem [resolvable:$true] %s362_s25 }
  0x1f   : > { %s2657_s23 = scalar_select %p2138_p8, 1, 0 }
  0x20   : > { %p1489_p9 = pneg %p2138_p8  ;;  %s2011_s27 = smov [#allocation10]  }
  0x21   : > { %s388_s28 = sshll.u32 %s2011_s27, 4  ;;  %s2659_s1 = sld [smem:[#allocation38_spill]]  ;;  %s2153_s28 = int_to_ptr.vmem [resolvable:$true] %s388_s28 }
  0x22   : > { %p2149_p11 = pnand %p1489_p9, %p2616_p1 }
  0x24   : > { %s2658_s26 = scalar_select %p2149_p11, 1, 0 }
  0x25   : > { %p2163_p13 = pneg %p2149_p11 }
  0x27   : > { %s1616_s11 = scalar_lea.hbm %s2659_s1, 512 }
  0x28   : > { %p1617_p12 = scmp.ne.s32.totalorder %s2659_s1, %s1616_s11  ;;  %p1623_p5 = scmp.lt.u32.totalorder %s1616_s11, %s2659_s1 }
  0x29   : > { %s2660_s24 = scalar_select %p2163_p13, 1, 0 }
  0x2a   : > { %p1619_p0 = pnand %p2163_p13, %p1617_p12 }
  0x2c   : > { %p1620_p3 = pneg %p1619_p0 }
  0x2e   : > { %p1625_p7 = pnand %p1623_p5, %p1620_p3 }
  0x30   : > { %1628 = shalt.err (!%p1625_p7)
}
  0x31   : > { %s1629_s29 = scalar_lea.vmem %s2142_s25, 512  ;;  %p1637_p2 = scmp.lt.s32.totalorder %s2142_s25, %s2142_s25 }
  0x32   : > { %p1630_p9 = scmp.ne.s32.totalorder %s2142_s25, %s1629_s29  ;;  %p1638_p6 = scmp.lt.s32.totalorder %s1629_s29, %s1629_s29 }
  0x34   : > { %p1632_p10 = pnand %p1630_p9, %p2163_p13  ;;  %p1639_p12 = por %p1638_p6, %p1637_p2 }
  0x36   : > { %p1633_p1 = pneg %p1632_p10 }
  0x38   : > { %p1640_p0 = pnand %p1639_p12, %p1633_p1 }
  0x3a   : > { %1643 = shalt.err (!%p1640_p0)
}
  0x3b   : > { %s2621_s30 = smov 128   ;;  %s2622_s22 = smov 8  }
  0x3c   : > { %1492 = dma.hbm_to_vmem [thread:$0]  (!%p2149_p11), %s2659_s1, 512, %s2142_s25, [#allocation8], %s2621_s30, %s2621_s30, %s2622_s22  }
  0x3d   : > { %s2661_s3 = sld [smem:[#allocation39_spill]] }
  0x43   : > { %s1644_s29 = scalar_lea.hbm %s2661_s3, 512 }
  0x44   : > { %p1645_p1 = scmp.ne.s32.totalorder %s2661_s3, %s1644_s29  ;;  %p1651_p10 = scmp.lt.u32.totalorder %s1644_s29, %s2661_s3 }
  0x46   : > { %p1647_p2 = pnand %p1645_p1, %p2163_p13 }
  0x48   : > { %p1648_p6 = pneg %p1647_p2 }
  0x4a   : > { %p1653_p3 = pnand %p1651_p10, %p1648_p6 }
  0x4c   : > { %1656 = shalt.err (!%p1653_p3)
}
  0x4d   : > { %s1657_s25 = scalar_lea.vmem %s2153_s28, 512  ;;  %p1665_p12 = scmp.lt.s32.totalorder %s2153_s28, %s2153_s28 }
  0x4e   : > { %p1658_p5 = scmp.ne.s32.totalorder %s2153_s28, %s1657_s25  ;;  %p1666_p0 = scmp.lt.s32.totalorder %s1657_s25, %s1657_s25 }
  0x50   : > { %p1660_p7 = pnand %p1658_p5, %p2163_p13  ;;  %p1667_p1 = por %p1666_p0, %p1665_p12 }
  0x52   : > { %p1661_p9 = pneg %p1660_p7 }
  0x54   : > { %p1668_p2 = pnand %p1667_p1, %p1661_p9 }
  0x56   : > { %1671 = shalt.err (!%p1668_p2)
}
  0x57   : > { %1498 = dma.hbm_to_vmem [thread:$0]  (!%p2149_p11), %s2661_s3, 512, %s2153_s28, [#allocation11], %s2621_s30, %s2621_s30, %s2622_s22  }
  0x58   : > { %s57_s13 = sadd.s32 1, %s2004_s17  ;;  %s66_s16 = sadd.s32 1, %s1996_s15 }
  0x59   : > { %p59_p6 = scmp.ge.s32.totalorder %s57_s13, 2  ;;  %p73_p10 = scmp.ne.s32.totalorder %s1996_s15, %s1992_s14 }
  0x5a   : > { %p74_p3 = scmp.eq.s32.totalorder %s2008_s18, 0  ;;  %p1529_p5 = scmp.lt.s32.totalorder %s2008_s18, 2 }
  0x5b   : > { %s2703_s13 = smov (%p59_p6, %s57_s13), 0  ;;  %p2663_p9 = scmp.eq.s32.totalorder %s2119_s19, 1 }
  0x5c   : > { %2662 = sst [smem:[#allocation35_spill]] %s2703_s13  ;;  %p75_p7 = por %p74_p3, %p73_p10 }
  0x5d   : > { %p2223_p12 = por %p2663_p9, %p73_p10  ;;  %s61_s12 = ssub.s32 %s2004_s17, %s2703_s13 }
  0x5e   : > { %s2230_s28 = sand.u32 1, %s1996_s15   ;;  %p64_p0 = scmp.eq.s32.totalorder %s61_s12, 0 }
  0x5f   : > { %s2664_s11 = scalar_select %p2223_p12, 1, 0 }
  0x60   : > { %s2233_s20 = sshll.u32 %s2230_s28, 3  ;;  %s2236_s27 = sshll.u32 %s2004_s17, 7 }
  0x61   : > { %2665 = sst [smem:[#allocation36_spill]] %s2664_s11  ;;  %p2238_p1 = pnand %p1529_p5, %p75_p7 }
  0x62   : > { %s2243_s25 = scalar_select %p64_p0, %s1996_s15, %s66_s16  }
  0x63   : > { %s2666_s29 = scalar_select %p2238_p1, 1, 0 }
  0x64   : > { %2667 = sst [smem:[#allocation37_spill]] %s2243_s25  ;;  %s2627_s9 = sand.u32 1, %s2008_s18  }
  0x65   : > { %s2668_s5 = sld [smem:[#allocation40_spill]]  ;;  %s436_s12 = scalar_lea.vmem [#allocation13], %s2233_s20 }
  0x66   : > { %s444_s1 = sshll.u32 %s436_s12, 4  ;;  %s2257_s3 = scalar_lea.sflag [#allocation14], %s2627_s9  ;;  %s2253_s1 = int_to_ptr.vmem [resolvable:$true] %s444_s1 }
  0x67   : > { %p2263_p6 = pneg %p2238_p1 }
  0x69   : > { %s2669_s16 = scalar_select %p2263_p6, 1, 0 }
  0x6b   : > { %s2250_s22 = scalar_lea.hbm %s2668_s5, %s2236_s27  ;;  %s1677_s12 = scalar_lea.hbm %s2668_s5, 256 }
  0x6c   : > { %s1672_s13 = scalar_lea.hbm %s2250_s22, 128  ;;  %p1678_p5 = scmp.lt.u32.totalorder %s2250_s22, %s2668_s5 }
  0x6d   : > { %p1673_p2 = scmp.ne.s32.totalorder %s2250_s22, %s1672_s13  ;;  %p1679_p7 = scmp.lt.u32.totalorder %s1677_s12, %s1672_s13 }
  0x6e   : > { %p1681_p0 = scmp.lt.u32.totalorder %s1672_s13, %s2250_s22 }
  0x6f   : > { %p1675_p10 = pnand %p2263_p6, %p1673_p2  ;;  %p1680_p9 = por %p1679_p7, %p1678_p5 }
  0x71   : > { %p1676_p3 = pneg %p1675_p10  ;;  %p1682_p12 = por %p1681_p0, %p1680_p9 }
  0x73   : > { %p1683_p4 = pnand %p1682_p12, %p1676_p3 }
  0x75   : > { %1686 = shalt.err (!%p1683_p4)
}
  0x76   : > { %s1687_s9 = scalar_lea.vmem %s2253_s1, 128  ;;  %s2014_s30 = smov [#allocation13]  }
  0x77   : > { %p1688_p2 = scmp.ne.s32.totalorder %s2253_s1, %s1687_s9  ;;  %s1692_s10 = sshll.u32 %s2014_s30, 4  ;;  %s1693_s10 = int_to_ptr.vmem [resolvable:$false] %s1692_s10 }
  0x78   : > { %s1694_s15 = scalar_lea.vmem %s1693_s10, 256  ;;  %p1695_p11 = scmp.lt.s32.totalorder %s2253_s1, %s1693_s10 }
  0x79   : > { %p1690_p10 = pnand %p1688_p2, %p2263_p6  ;;  %p1696_p13 = scmp.lt.s32.totalorder %s1694_s15, %s1687_s9 }
  0x7b   : > { %p1691_p8 = pneg %p1690_p10  ;;  %p1697_p5 = por %p1696_p13, %p1695_p11 }
  0x7d   : > { %p1698_p7 = pnand %p1697_p5, %p1691_p8 }
  0x7f   : > { %1701 = shalt.err (!%p1698_p7)
}
  0x80   : > { %1508 = dma.hbm_to_vmem [thread:$0]  (!%p2238_p1), %s2250_s22, 128, %s2253_s1, %s2257_s3  }
  0x81   : > { %s2291_s12 = scalar_lea.hbm %s2611_s7, %s2236_s27  ;;  %s476_s9 = scalar_lea.vmem [#allocation16], %s2233_s20 }
  0x82   : > { %s484_s30 = sshll.u32 %s476_s9, 4  ;;  %s2015_s10 = smov [#allocation9]   ;;  %s2294_s30 = int_to_ptr.vmem [resolvable:$true] %s484_s30 }
  0x83   : > { %s2296_s15 = sshll.u32 %s2015_s10, 4  ;;  %s2670_s5 = sand.u32 1, %s2008_s18   ;;  %s379_s15 = int_to_ptr.vmem [resolvable:$true] %s2296_s15 }
  0x84   : > { %s2300_s11 = scalar_lea.sflag [#allocation17], %s2670_s5  ;;  %s1702_s1 = scalar_lea.hbm %s2291_s12, 128 }
  0x85   : > { %p1703_p4 = scmp.ne.s32.totalorder %s2291_s12, %s1702_s1  ;;  %s1707_s25 = scalar_lea.hbm %s2611_s7, 256 }
  0x86   : > { %p1708_p13 = scmp.lt.u32.totalorder %s2291_s12, %s2611_s7  ;;  %p1709_p12 = scmp.lt.u32.totalorder %s1707_s25, %s1702_s1 }
  0x87   : > { %p1705_p8 = pnand %p1703_p4, %p2263_p6  ;;  %p1711_p9 = scmp.lt.u32.totalorder %s1702_s1, %s2291_s12 }
  0x88   : > { %p1710_p3 = por %p1709_p12, %p1708_p13 }
  0x89   : > { %p1706_p11 = pneg %p1705_p8 }
  0x8a   : > { %p1712_p0 = por %p1711_p9, %p1710_p3 }
  0x8c   : > { %p1713_p2 = pnand %p1712_p0, %p1706_p11 }
  0x8e   : > { %1716 = shalt.err (!%p1713_p2)
}
  0x8f   : > { %s1717_s5 = scalar_lea.vmem %s2294_s30, 128  ;;  %s2016_s9 = smov [#allocation16]  }
  0x90   : > { %p1718_p10 = scmp.ne.s32.totalorder %s2294_s30, %s1717_s5  ;;  %s1722_s10 = sshll.u32 %s2016_s9, 4  ;;  %s1723_s10 = int_to_ptr.vmem [resolvable:$false] %s1722_s10 }
  0x91   : > { %s1724_s19 = scalar_lea.vmem %s1723_s10, 256  ;;  %p1725_p4 = scmp.lt.s32.totalorder %s2294_s30, %s1723_s10 }
  0x92   : > { %p1720_p5 = pnand %p1718_p10, %p2263_p6  ;;  %p1726_p8 = scmp.lt.s32.totalorder %s1724_s19, %s1717_s5 }
  0x94   : > { %p1721_p7 = pneg %p1720_p5  ;;  %p1727_p13 = por %p1726_p8, %p1725_p4 }
  0x96   : > { %p1728_p12 = pnand %p1727_p13, %p1721_p7 }
  0x98   : > { %1731 = shalt.err (!%p1728_p12)
}
  0x99   : > { %1514 = dma.hbm_to_vmem [thread:$0]  (!%p2238_p1), %s2291_s12, 128, %s2294_s30, %s2300_s11  }
  0x9a   : > { %s1732_s22 = scalar_lea.hbm %s2606_s2, 16  ;;  %p2671_p3 = scmp.ne.s32.totalorder %s2660_s24, 0 }
  0x9b   : > { %p1733_p11 = scmp.ne.s32.totalorder %s2606_s2, %s1732_s22  ;;  %p1739_p2 = scmp.lt.u32.totalorder %s1732_s22, %s2606_s2 }
  0x9d   : > { %p1735_p9 = pnand %p1733_p11, %p2671_p3 }
  0x9f   : > { %p1736_p0 = pneg %p1735_p9 }
  0xa1   : > { %p1741_p10 = pnand %p1739_p2, %p1736_p0 }
  0xa3   : > { %1744 = shalt.err (!%p1741_p10)
}
  0xa4   : > { %s1745_s10 = scalar_lea.vmem %s379_s15, 16  ;;  %s1752_s12 = scalar_lea.vmem %s379_s15, 32 }
  0xa5   : > { %p1746_p5 = scmp.ne.s32.totalorder %s379_s15, %s1745_s10  ;;  %p1753_p8 = scmp.lt.s32.totalorder %s379_s15, %s379_s15 }
  0xa6   : > { %p1754_p13 = scmp.lt.s32.totalorder %s1752_s12, %s1745_s10 }
  0xa7   : > { %p1748_p7 = pnand %p1746_p5, %p2671_p3 }
  0xa8   : > { %p1755_p12 = por %p1754_p13, %p1753_p8 }
  0xa9   : > { %p1749_p4 = pneg %p1748_p7 }
  0xab   : > { %p1756_p1 = pnand %p1755_p12, %p1749_p4 }
  0xad   : > { %1759 = shalt.err (!%p1756_p1)
}
  0xae   : > { %p2672_p11 = scmp.ne.s32.totalorder %s2658_s26, 0  ;;  %s2017_s21 = smov [#allocation12]  }
  0xaf   : > { %s402_s1 = sshll.u32 %s2017_s21, 4  ;;  %s1760_s25 = scalar_lea.hbm %s2608_s4, 16  ;;  %s403_s1 = int_to_ptr.vmem [resolvable:$true] %s402_s1 }
  0xb0   : > { %1495 = dma.hbm_to_vmem [thread:$0]  (!%p2672_p11), %s2606_s2, 16, %s379_s15, [#allocation8]  }
  0xb1   : > { %p1761_p9 = scmp.ne.s32.totalorder %s2608_s4, %s1760_s25  ;;  %p1767_p2 = scmp.lt.u32.totalorder %s1760_s25, %s2608_s4 }
  0xb3   : > { %p1763_p1 = pnand %p1761_p9, %p2671_p3 }
  0xb5   : > { %p1764_p0 = pneg %p1763_p1 }
  0xb7   : > { %p1769_p10 = pnand %p1767_p2, %p1764_p0 }
  0xb9   : > { %1772 = shalt.err (!%p1769_p10)
}
  0xba   : > { %s1773_s15 = scalar_lea.vmem %s403_s1, 16  ;;  %s1780_s30 = scalar_lea.vmem %s403_s1, 32 }
  0xbb   : > { %p1774_p5 = scmp.ne.s32.totalorder %s403_s1, %s1773_s15  ;;  %p1781_p8 = scmp.lt.s32.totalorder %s403_s1, %s403_s1 }
  0xbc   : > { %p1782_p13 = scmp.lt.s32.totalorder %s1780_s30, %s1773_s15 }
  0xbd   : > { %p1776_p7 = pnand %p1774_p5, %p2671_p3 }
  0xbe   : > { %p1783_p12 = por %p1782_p13, %p1781_p8 }
  0xbf   : > { %p1777_p4 = pneg %p1776_p7 }
  0xc1   : > { %p1784_p6 = pnand %p1783_p12, %p1777_p4 }
  0xc3   : > { %1787 = shalt.err (!%p1784_p6)
}
  0xc4   : > { %1501 = dma.hbm_to_vmem [thread:$0]  (!%p2672_p11), %s2608_s4, 16, %s403_s1, [#allocation11]  }
  0xc5   : > { %s2365_s13 = scalar_lea.hbm %s2604_s0, %s2236_s27  ;;  %s417_s25 = scalar_lea.vmem [#allocation4], %s2233_s20 }
  0xc6   : > { %s425_s26 = sshll.u32 %s417_s25, 4  ;;  %s1363_s5 = sshll.u32 %s2230_s28, 4  ;;  %s2368_s26 = int_to_ptr.vmem [resolvable:$true] %s425_s26 }
  0xc7   : > { %s414_s9 = scalar_lea.sflag [#allocation5], %s2230_s28  ;;  %s1788_s10 = scalar_lea.hbm %s2365_s13, 128 }
  0xc8   : > { %p1789_p6 = scmp.ne.s32.totalorder %s2365_s13, %s1788_s10  ;;  %p2673_p3 = scmp.ne.s32.totalorder %s2669_s16, 0 }
  0xc9   : > { %s1793_s15 = scalar_lea.hbm %s2604_s0, 256  ;;  %p1794_p1 = scmp.lt.u32.totalorder %s2365_s13, %s2604_s0 }
  0xca   : > { %p1791_p9 = pnand %p1789_p6, %p2673_p3  ;;  %p1795_p0 = scmp.lt.u32.totalorder %s1793_s15, %s1788_s10 }
  0xcb   : > { %p1797_p10 = scmp.lt.u32.totalorder %s1788_s10, %s2365_s13 }
  0xcc   : > { %p1792_p11 = pneg %p1791_p9  ;;  %p1796_p2 = por %p1795_p0, %p1794_p1 }
  0xce   : > { %p1798_p5 = por %p1797_p10, %p1796_p2 }
  0xd0   : > { %p1799_p7 = pnand %p1798_p5, %p1792_p11 }
  0xd2   : > { %1802 = shalt.err (!%p1799_p7)
}
  0xd3   : > { %s1803_s21 = scalar_lea.vmem %s2368_s26, 128  ;;  %s2018_s24 = smov [#allocation4]  }
  0xd4   : > { %p1804_p4 = scmp.ne.s32.totalorder %s2368_s26, %s1803_s21  ;;  %s1808_s22 = sshll.u32 %s2018_s24, 4  ;;  %s1809_s22 = int_to_ptr.vmem [resolvable:$false] %s1808_s22 }
  0xd5   : > { %s1810_s25 = scalar_lea.vmem %s1809_s22, 256  ;;  %p1811_p12 = scmp.lt.s32.totalorder %s2368_s26, %s1809_s22 }
  0xd6   : > { %p1806_p8 = pnand %p1804_p4, %p2673_p3  ;;  %p1812_p6 = scmp.lt.s32.totalorder %s1810_s25, %s1803_s21 }
  0xd8   : > { %p1807_p13 = pneg %p1806_p8  ;;  %p1813_p9 = por %p1812_p6, %p1811_p12 }
  0xda   : > { %p1814_p1 = pnand %p1813_p9, %p1807_p13 }
  0xdc   : > { %1817 = shalt.err (!%p1814_p1)
}
  0xdd   : > { %p2674_p11 = scmp.ne.s32.totalorder %s2666_s29, 0  ;;  %s1394_s10 = sshll.u32 %s2004_s17, 8 }
  0xde   : > { %s2397_s15 = scalar_lea.hbm %s2610_s6, %s1394_s10  ;;  %s455_s30 = scalar_lea.vmem [#allocation15], %s1363_s5 }
  0xdf   : > { %1505 = dma.hbm_to_vmem [thread:$0]  (!%p2674_p11), %s2365_s13, 128, %s2368_s26, %s414_s9  }
  0xe0   : > { %s462_s19 = sshll.u32 %s455_s30, 4  ;;  %s1818_s21 = scalar_lea.hbm %s2397_s15, 256  ;;  %s2401_s19 = int_to_ptr.vmem [resolvable:$true] %s462_s19 }
  0xe1   : > { %p1819_p0 = scmp.ne.s32.totalorder %s2397_s15, %s1818_s21  ;;  %s1823_s9 = scalar_lea.hbm %s2610_s6, 512 }
  0xe2   : > { %p1824_p5 = scmp.lt.u32.totalorder %s2397_s15, %s2610_s6  ;;  %p1825_p7 = scmp.lt.u32.totalorder %s1823_s9, %s1818_s21 }
  0xe3   : > { %p1821_p2 = pnand %p1819_p0, %p2673_p3  ;;  %p1827_p8 = scmp.lt.u32.totalorder %s1818_s21, %s2397_s15 }
  0xe4   : > { %p1826_p4 = por %p1825_p7, %p1824_p5 }
  0xe5   : > { %p1822_p10 = pneg %p1821_p2 }
  0xe6   : > { %p1828_p13 = por %p1827_p8, %p1826_p4 }
  0xe8   : > { %p1829_p12 = pnand %p1828_p13, %p1822_p10 }
  0xea   : > { %1832 = shalt.err (!%p1829_p12)
}
  0xeb   : > { %s1833_s28 = scalar_lea.vmem %s2401_s19, 256  ;;  %s2019_s5 = smov [#allocation15]  }
  0xec   : > { %p1834_p6 = scmp.ne.s32.totalorder %s2401_s19, %s1833_s28  ;;  %s1838_s25 = sshll.u32 %s2019_s5, 4  ;;  %s1839_s25 = int_to_ptr.vmem [resolvable:$false] %s1838_s25 }
  0xed   : > { %s1840_s10 = scalar_lea.vmem %s1839_s25, 512  ;;  %p1841_p0 = scmp.lt.s32.totalorder %s2401_s19, %s1839_s25 }
  0xee   : > { %p1836_p9 = pnand %p1834_p6, %p2673_p3  ;;  %p1842_p2 = scmp.lt.s32.totalorder %s1840_s10, %s1833_s28 }
  0xf0   : > { %p1837_p1 = pneg %p1836_p9  ;;  %p1843_p5 = por %p1842_p2, %p1841_p0 }
  0xf2   : > { %p1844_p7 = pnand %p1843_p5, %p1837_p1 }
  0xf4   : > { %1847 = shalt.err (!%p1844_p7)
}
  0xf5   : > { %s2675_s1 = smov 8   ;;  %s2676_s12 = smov 128  }
  0xf6   : > { %1511 = dma.hbm_to_vmem [thread:$0]  (!%p2674_p11), %s2397_s15, 256, %s2401_s19, %s2257_s3, %s2676_s12, %s2676_s12, %s2675_s1  }
  0xf7   : > { %s2432_s13 = scalar_lea.hbm %s2612_s8, %s2236_s27  ;;  %s495_s26 = scalar_lea.vmem [#allocation18], %s2233_s20 }
  0xf8   : > { %s502_s9 = sshll.u32 %s495_s26, 4  ;;  %s1848_s24 = scalar_lea.hbm %s2432_s13, 128  ;;  %s503_s9 = int_to_ptr.vmem [resolvable:$true] %s502_s9 }
  0xf9   : > { %p1849_p10 = scmp.ne.s32.totalorder %s2432_s13, %s1848_s24  ;;  %s1853_s3 = scalar_lea.hbm %s2612_s8, 256 }
  0xfa   : > { %p1854_p13 = scmp.lt.u32.totalorder %s2432_s13, %s2612_s8  ;;  %p1855_p12 = scmp.lt.u32.totalorder %s1853_s3, %s1848_s24 }
  0xfb   : > { %p1851_p4 = pnand %p1849_p10, %p2673_p3  ;;  %p1857_p9 = scmp.lt.u32.totalorder %s1848_s24, %s2432_s13 }
  0xfc   : > { %p1856_p6 = por %p1855_p12, %p1854_p13 }
  0xfd   : > { %p1852_p8 = pneg %p1851_p4 }
  0xfe   : > { %p1858_p1 = por %p1857_p9, %p1856_p6 }
 0x100   : > { %p1859_p0 = pnand %p1858_p1, %p1852_p8 }
 0x102   : > { %1862 = shalt.err (!%p1859_p0)
}
 0x103   : > { %s1863_s20 = scalar_lea.vmem %s503_s9, 128  ;;  %s2020_s27 = smov [#allocation18]  }
 0x104   : > { %p1864_p2 = scmp.ne.s32.totalorder %s503_s9, %s1863_s20  ;;  %s1868_s5 = sshll.u32 %s2020_s27, 4  ;;  %s1869_s5 = int_to_ptr.vmem [resolvable:$false] %s1868_s5 }
 0x105   : > { %s1870_s25 = scalar_lea.vmem %s1869_s5, 256  ;;  %p1871_p10 = scmp.lt.s32.totalorder %s503_s9, %s1869_s5 }
 0x106   : > { %p1866_p5 = pnand %p1864_p2, %p2673_p3  ;;  %p1872_p4 = scmp.lt.s32.totalorder %s1870_s25, %s1863_s20 }
 0x108   : > { %p1867_p7 = pneg %p1866_p5  ;;  %p1873_p11 = por %p1872_p4, %p1871_p10 }
 0x10a   : > { %p1874_p12 = pnand %p1873_p11, %p1867_p7 }
 0x10c   : > { %1877 = shalt.err (!%p1874_p12)
}
 0x10d   : > { %p2677_p13 = scmp.ne.s32.totalorder %s2666_s29, 0  ;;  %p2678_p8 = scmp.ne.s32.totalorder %s2657_s23, 0 }
 0x10e   : > { %s2679_s16 = sld [smem:[#allocation33_spill]] (!%p2678_p8)  ;;  %s2456_s10 = sand.u32 (!%p2678_p8), 1, %s1992_s14  }
 0x10f   : > { %1517 = dma.hbm_to_vmem [thread:$0]  (!%p2677_p13), %s2432_s13, 128, %s503_s9, %s2300_s11  }
 0x110   : > { %511 = sbr.rel (%p2678_p8) target bundleno = 1859 (0x743), region = 56  ;;  %s2459_s1 = sshll.u32 (!%p2678_p8), %s2456_s10, 3 }
 0x111   : > { %s514_s12 = scalar_lea.sflag (!%p2678_p8), [#allocation5], %s2456_s10  ;;  %s517_s30 = scalar_lea.vmem (!%p2678_p8), [#allocation4], %s2459_s1 }
 0x114   : > { %p2680_p3 = scmp.ne.s32.totalorder (!%p2678_p8), %s2679_s16, 0 }
 0x117   : > { %1959 = dma.done.wait (%p2680_p3), %s514_s12, 128  }
 0x118   : > { %1961 = vsyncadd (%p2680_p3), %s514_s12, 4294967168  ;;  %s2681_s11 = sld [smem:[#allocation32_spill]] }
 0x11e   : > { %p2682_p11 = scmp.eq.s32.totalorder %s2681_s11, 0 }
 0x120   : > { %1963 = dma.done.wait (%p2682_p11), [#allocation8], 528   ;;  %p2683_p6 = pmov %p2682_p11 }
 0x122   : > { %1965 = vsyncadd (%p2683_p6), [#allocation8], 4294966768  ;;  %p2684_p9 = pmov %p2683_p6 }
 0x123   : > { %p2685_p1 = pmov %p2683_p6 }
 0x124   : > { %1967 = dma.done.wait (%p2684_p9), [#allocation11], 528  }
 0x125   : > { %1969 = vsyncadd (%p2685_p1), [#allocation11], 4294966768  ;;  %s538_s23 = sand.u32 1, %s2681_s11   ;;  %s542_s21 = scalar_lea.vmem [#allocation13], %s2459_s1 }
 0x126   : > { %s539_s29 = scalar_lea.sflag [#allocation14], %s538_s23 }
 0x127   : > { %1971 = dma.done.wait (%p2680_p3), %s539_s29, 384  }
 0x128   : > { %1973 = vsyncadd (%p2680_p3), %s539_s29, 4294966912  ;;  %s1377_s13 = sshll.u32 %s2456_s10, 4  ;;  %s557_s9 = scalar_lea.sflag [#allocation17], %s538_s23 }
 0x129   : > { %s2482_s26 = scalar_lea.vmem [#allocation15], %s1377_s13  ;;  %s560_s24 = scalar_lea.vmem [#allocation16], %s2459_s1 }
 0x12a   : > { %1975 = dma.done.wait (%p2680_p3), %s557_s9, 256  }
 0x12b   : > { %1977 = vsyncadd (%p2680_p3), %s557_s9, 4294967040  ;;  %v2021_v0 = vmov 0.0|0.0   ;;  %vm2022_vm0 = vmmov 0   ;;  %v2023_v1 = vmov 0.0   ;;  %v751_v2 = vld [vmem:[#allocation10] sm:$0xff]  ;;  %v752_v3 = vld [vmem:[#allocation10 + $0x8] sm:$0xff] }
 0x12c   : > { %1450 = vmatprep.subr.bf16.mxu1 %v2021_v0  ;;  %1429 = vmatprep.mubr.msk.f32.mxu1 %vm2022_vm0, %v2023_v1  ;;  %v753_v4 = vld [vmem:[#allocation10 + $0x10] sm:$0xff]  ;;  %v1451_v5 = vpack.c.bf16 %v752_v3, %v751_v2  ;;  %v754_v6 = vld [vmem:[#allocation10 + $0x18] sm:$0xff]  ;;  %v640_v8 = vld [vmem:[#allocation7 + $0x8] sm:$0xff]  ;;  %vm650_vm1 = vcmask 261120   ;;  %vm832_vm2 = vcmask 23552   ;;  %s2499_s22 = scalar_lea.vmem [#allocation19], %s2459_s1 }
 0x12d   : > { %1444 = vmatprep.subr.bf16.mxu0 %v2021_v0  ;;  %1418 = vmatprep.mubr.msk.f32.mxu0 %vm2022_vm0, %v2023_v1  ;;  %v639_v7 = vld [vmem:[#allocation7] sm:$0xff]  ;;  %v641_v9 = vld [vmem:[#allocation7 + $0x10] sm:$0xff]  ;;  %v642_v10 = vld [vmem:[#allocation7 + $0x18] sm:$0xff]  ;;  %v1454_v11 = vpack.c.bf16 %v754_v6, %v753_v4  ;;  %v2024_v29 = vmov 1   ;;  %v2025_v30 = vmov 0   ;;  %vm635_vm3 = vcmask 7168  }
 0x12e   : > { %1452 = vmatpush3.bf16.msra.mxu1 %v1451_v5  ;;  %v1445_v12 = vpack.c.bf16 %v640_v8, %v639_v7  ;;  %v1448_v13 = vpack.c.bf16 %v642_v10, %v641_v9  ;;  %v638_v14 = vld [vmem:[%s517_s30] sm:$0xff]  ;;  %v1384_v15 = vld [vmem:[#allocation12] ss:$0 sm:$0xff]  ;;  %v1382_v20 = vld [vmem:[#allocation9] ss:$0 sm:$0xff]  ;;  %1600 = vset.pattern.permute.xlu0 %v2024_v29  ;;  %v2026_v31 = vmov -inf  }
 0x12f   : > { %1453 = vmatprep.subr.bf16.mxu1 %v2021_v0  ;;  %1599 = vset.pattern.permute.xlu1 %v2025_v30  ;;  %636 = vst.msk [vmem:[#allocation2] sm:$0xff] %vm635_vm3, %v2026_v31  ;;  %637 = vst.msk [vmem:[#allocation3] sm:$0xff] %vm635_vm3, %v2023_v1  ;;  %v875_v36 = vld [vmem:[%s2482_s26] sm:$0xff]  ;;  %v876_v37 = vld [vmem:[%s2482_s26 + $0x8] sm:$0xff]  ;;  %s569_s28 = scalar_lea.vmem [#allocation18], %s2459_s1  ;;  %vm877_vm4 = vcmask 130048  }
 0x130   : > { %1446 = vmatpush3.bf16.msra.mxu0 %v1445_v12  ;;  %v1457_v39 = vpack.c.bf16 %v876_v37, %v875_v36  ;;  %v957_v41 = vld [vmem:[%s569_s28] sm:$0xff]  ;;  %v951_v42 = vld [vmem:[%s560_s24] sm:$0xff]  ;;  %vm958_vm5 = vcmask 64512   ;;  %v2027_v60 = vmov 2   ;;  %s2028_s3 = smov 2   ;;  %s2029_s15 = smov 32  }
 0x131   : > { %1447 = vmatprep.subr.bf16.mxu0 %v2021_v0  ;;  %v868_v43 = vld [vmem:[%s542_s21] sm:$0xff]  ;;  %s2030_s19 = smov 48   ;;  %vm1036_vm6 = vcmask 392448   ;;  %vm1042_vm7 = vcmask 458112   ;;  %vm1049_vm9 = vcmask 457728   ;;  %s2686_s20 = sld [smem:[#allocation31_spill]] }
 0x132   : > { %1455 = vmatpush3.bf16.msra.mxu1 %v1454_v11  ;;  %s2687_s27 = sld [smem:[#allocation36_spill]]  ;;  %s2688_s12 = sld [smem:[#allocation41_spill]] }
 0x133   : > { %1439 = vmatprep.subr.mxu1 %v2023_v1  ;;  %s1091_s11 = sshll.u32 %s2499_s22, 4  ;;  %s1072_s23 = scalar_lea.sflag [#allocation6], %s2456_s10  ;;  %s1092_s11 = int_to_ptr.vmem [resolvable:$true] %s1091_s11 }
 0x134   : > { %1449 = vmatpush3.bf16.msra.mxu0 %v1448_v13  ;;  %v1045_v13 = vlaneseq  ;;  %s1878_s29 = scalar_lea.vmem %s1092_s11, 128  ;;  %s2031_s21 = smov [#allocation19]  }
 0x135   : > { %1430 = vmatmul.mubr.msk.f32.vlgmr.msra.gmra.mrb[0].mxu1 %vm650_vm1, %v638_v14  ;;  %1456 = vmatprep.subr.bf16.mxu0 %v2021_v0  ;;  %p1879_p0 = scmp.ne.s32.totalorder %s1092_s11, %s1878_s29  ;;  %s1882_s13 = sshll.u32 %s2031_s21, 4  ;;  %s1883_s13 = int_to_ptr.vmem [resolvable:$false] %s1882_s13 }
 0x136   : > { %1441 = vmatprep.mubr.msk.f32.mxu1 %vm2022_vm0, %v2023_v1  ;;  %v724_v33 = vld [vmem:[#allocation2] sm:$0xff]  ;;  %1440 = vmatpush3.msra.mxu1 %v957_v41  ;;  %v728_v55 = vld [vmem:[#allocation3] sm:$0xff]  ;;  %s1884_s26 = scalar_lea.vmem %s1883_s13, 256  ;;  %p1885_p10 = scmp.lt.s32.totalorder %s1092_s11, %s1883_s13 }
 0x137   : > { %1419 = vmatmul.mubr.msk.f32.vlgmr.msra.gmra.mrb[0].mxu0 %vm650_vm1, %v638_v14  ;;  %s1390_s5 = sshll.u32 %s2686_s20, 7  ;;  %p1886_p4 = scmp.lt.s32.totalorder %s1884_s26, %s1878_s29 }
 0x138   : > { %1436 = vmatprep.mubr.msk.f32.mxu0 %vm2022_vm0, %v2023_v1  ;;  %1458 = vmatpush3.bf16.msra.mxu0 %v1457_v39  ;;  %s2527_s30 = scalar_lea.hbm %s2688_s12, %s1390_s5  ;;  %p2689_p2 = scmp.ne.s32.totalorder %s2687_s27, 0 }
 0x139   : > { %p1887_p12 = por %p1886_p4, %p1885_p10 }
 0x13a   : > { %p1880_p5 = pnand %p1879_p0, %p2689_p2 }
 0x13c   : > { %p1881_p7 = pneg %p1880_p5 }
 0x13e   : > { %p1888_p13 = pnand %p1887_p12, %p1881_p7 }
 0x208   : > { %v828_v16 = vpop.f32.mrb[0].mxu1 }
 0x209   : > { %v829_v17 = vadd.f32 %v1384_v15, %v828_v16  ;;  %v1431_v18 = vpop.f32.mrb[1].mxu1  ;;  %v1046_v15 = vand.u32 127, %v1045_v13 }
 0x20a   : > { %v720_v21 = vpop.f32.mrb[0].mxu0 }
 0x20b   : > { %v833_v19 = vsel %vm832_vm2, %v829_v17, -inf  ;;  %v721_v22 = vadd.f32 %v1382_v20, %v720_v21  ;;  %v1420_v23 = vpop.f32.mrb[1].mxu0  ;;  %vm1047_vm8 = vcmp.eq.s32.totalorder %v1046_v15, 48 }
 0x20c   : > { %834 = vmax.xlane.f32.xlu0 %v833_v19 }
 0x20d   : > { %750 = vst.msk [vmem:[%s2499_s22] sm:$0xff] %vm650_vm1, %v721_v22  ;;  %725 = vmax.xlane.f32.xlu1 %v721_v22 }
 0x214   : > { %v851_v6 = vld [vmem:[%s2499_s22] sm:$0xff] }
 0x299   : > { %v835_v24 = vpop.xlane.xlu0 %834 }
 0x29a   : > { %v836_v25 = vsub.f32 %v829_v17, %v835_v24  ;;  %v726_v32 = vpop.xlane.xlu1 %725 }
 0x29b   : > { %v727_v34 = vmax.f32 %v724_v33, %v726_v32 }
 0x29c   : > { %v837_v26 = vmul.f32 1.442695, %v836_v25 }
 0x29d   : > { %746 = vst.msk [vmem:[#allocation2] sm:$0xff] %vm635_vm3, %v727_v34  ;;  %v729_v52 = vsub.f32 %v724_v33, %v727_v34 }
 0x29e   : > { %1604 = vpow2.f32 %v837_v26 }
 0x29f   : > { %v730_v53 = vmul.f32 1.442695, %v729_v52 }
 0x2a4   : > { %v852_v62 = vld [vmem:[#allocation2] sm:$0xff] }
 0x2a8   : > { %v1605_v27 = vpop.eup %1604 }
 0x2a9   : > { %v839_v28 = vsel %vm832_vm2, %v1605_v27, 0.0 }
 0x2aa   : > { %840 = vadd.xlane.f32.xlu0 %v839_v28 }
 0x337   : > { %v841_v35 = vpop.xlane.xlu0 %840 }
 0x338   : > { %1606 = vrcp.f32 %v841_v35 }
 0x342   : > { %v1607_v38 = vpop.eup %1606 }
 0x343   : > { %v843_v40 = vmul.f32 %v1607_v38, %v1605_v27 }
 0x345   : > { %953 = vperm.xlu0 %1600, %v843_v40   ;;  %871 = vperm.xlu1 %1599, %v843_v40  }
 0x349   : > { %735 = vperm.xlu1 %1599, %v727_v34   ;;  %1601 = vset.pattern.permute.xlu0 %v2025_v30 }
 0x34d   : > { %1602 = vset.pattern.permute.xlu1 %v2027_v60 }
 0x3c4   : > { %v954_v44 = vpop.permute.xlu0 %953  ;;  %v872_v45 = vpop.permute.xlu1 %871 }
 0x3c5   : > { %v956_v46 = vmul.f32 %v954_v44, %v951_v42  ;;  %v874_v47 = vmul.f32 %v872_v45, %v868_v43 }
 0x3c7   : > { %1437 = vmatmul.mubr.msk.f32.vlgmr.msra.gmra.mrb[2].mxu0 %vm877_vm4, %v874_v47  ;;  %1442 = vmatmul.mubr.msk.f32.vlgmr.msra.gmra.mrb[2].mxu1 %vm958_vm5, %v956_v46 }
 0x3c8   : > { %v736_v48 = vpop.permute.xlu1 %735 }
 0x3c9   : > { %v738_v49 = vsub.f32 %v721_v22, %v736_v48 }
 0x3cb   : > { %v739_v50 = vmul.f32 1.442695, %v738_v49 }
 0x3cd   : > { %1608 = vpow2.f32 %v739_v50 }
 0x3ce   : > { %1610 = vpow2.f32 %v730_v53 }
 0x3d7   : > { %v1609_v51 = vpop.eup %1608 }
 0x3d8   : > { %741 = vadd.xlane.f32.xlu1 %v1609_v51  ;;  %v1611_v54 = vpop.eup %1610 }
 0x3d9   : > { %v732_v56 = vmul.f32 %v1611_v54, %v728_v55 }
 0x465   : > { %v742_v57 = vpop.xlane.xlu1 %741 }
 0x466   : > { %v743_v58 = vadd.f32 %v742_v57, %v732_v56 }
 0x468   : > { %745 = vst.msk [vmem:[#allocation3] sm:$0xff] %vm635_vm3, %v743_v58 }
 0x46f   : > { %v844_v59 = vld [vmem:[#allocation3] sm:$0xff] }
 0x470   : > { %1612 = vrcp.f32 %v844_v59 }
 0x47a   : > { %v1613_v61 = vpop.eup %1612 }
 0x47b   : > { %847 = vrot.lane.b32.xlu0 %v1613_v61, %s2028_s3 }
 0x47f   : > { %855 = vperm.xlu0 %1601, %v852_v62  }
 0x483   : > { %1603 = vset.pattern.permute.xlu0 %v2024_v29 }
 0x49a   : > { %v947_v63 = vpop.f32.mrb[2].mxu0  ;;  %v1028_v0 = vpop.f32.mrb[2].mxu1 }
 0x49b   : > { %v1438_v1 = vpop.f32.mrb[3].mxu0  ;;  %v1443_v2 = vpop.f32.mrb[3].mxu1  ;;  %1033 = vrot.lane.b32.xlu0 %v947_v63, %s2029_s15 }
 0x49f   : > { %1039 = vrot.lane.b32.xlu0 %v1028_v0, %s2030_s19 }
 0x4ed   : > { %v848_v3 = vpop.permute.xlu0 %847 }
 0x4ee   : > { %v850_v4 = vmul.f32 %v848_v3, %v843_v40 }
 0x4f0   : > { %863 = vperm.xlu1 %1602, %v850_v4  }
 0x4fe   : > { %v856_v5 = vpop.permute.xlu0 %855 }
 0x4ff   : > { %v858_v7 = vsub.f32 %v851_v6, %v856_v5 }
 0x501   : > { %v859_v8 = vmul.f32 1.442695, %v858_v7 }
 0x503   : > { %1614 = vpow2.f32 %v859_v8 }
 0x50d   : > { %v1034_v9 = vpop.permute.xlu0 %1033  ;;  %v1615_v10 = vpop.eup %1614 }
 0x511   : > { %v1040_v14 = vpop.permute.xlu0 %1039 }
 0x56f   : > { %v864_v11 = vpop.permute.xlu1 %863 }
 0x570   : > { %v866_v12 = vmul.f32 %v1615_v10, %v864_v11 }
 0x572   : > { %867 = vst.msk [vmem:[%s2499_s22] sm:$0xff] %vm650_vm1, %v866_v12 }
 0x573   : > { %1037 = vst.msk [vmem:[%s2499_s22] sm:$0xff] %vm1036_vm6, %v1034_v9 }
 0x574   : > { %1043 = vst.msk [vmem:[%s2499_s22] sm:$0xff] %vm1042_vm7, %v1040_v14 }
 0x57b   : > { %v1044_v16 = vld [vmem:[%s2499_s22] sm:$0xff] }
 0x57c   : > { %v1048_v17 = vsel %vm1047_vm8, -1.0, %v1044_v16 }
 0x57d   : > { %v1050_v18 = vsel %vm1049_vm9, %v1048_v17, -inf }
 0x57e   : > { %1051 = vmax.xlane.f32.xlu0 %v1050_v18 }
 0x60b   : > { %v1052_v19 = vpop.xlane.xlu0 %1051 }
 0x60c   : > { %vm1053_vm10 = vcmp.eq.f32.partialorder %v1048_v17, %v1052_v19 }
 0x60d   : > { %v1054_v20 = vsel %vm1053_vm10, %v1046_v15, 2147483647 }
 0x60e   : > { %v1055_v21 = vsel %vm1049_vm9, %v1054_v20, 2147483647 }
 0x60f   : > { %v1057_v22 = vshra.s32 %v1055_v21, 16  ;;  %v1056_v24 = vand.u32 65535, %v1055_v21 }
 0x611   : > { %v1059_v23 = vcvt.s32.f32 %v1057_v22  ;;  %v1058_v26 = vcvt.s32.f32 %v1056_v24 }
 0x613   : > { %1060 = vmin.xlane.f32.xlu1 %v1059_v23 }
 0x6a0   : > { %v1061_v25 = vpop.xlane.xlu1 %1060 }
 0x6a1   : > { %vm1062_vm11 = vcmp.eq.f32.partialorder %v1059_v23, %v1061_v25 }
 0x6a2   : > { %v1063_v27 = vsel %vm1062_vm11, %v1058_v26, inf }
 0x6a3   : > { %1064 = vmin.xlane.f32.xlu0 %v1063_v27 }
 0x6a4   : > { %1891 = shalt.err (!%p1888_p13)
}
 0x6a5   : > { %s1892_s9 = scalar_lea.hbm %s2527_s30, 128  ;;  %s1896_s28 = scalar_lea.hbm %s2688_s12, 256 }
 0x6a6   : > { %p1893_p8 = scmp.ne.s32.totalorder %s2527_s30, %s1892_s9  ;;  %p1897_p6 = scmp.lt.u32.totalorder %s2527_s30, %s2688_s12 }
 0x6a7   : > { %p1898_p9 = scmp.lt.u32.totalorder %s1896_s28, %s1892_s9  ;;  %p1900_p0 = scmp.lt.u32.totalorder %s1892_s9, %s2527_s30 }
 0x6a8   : > { %p1894_p3 = pnand %p1893_p8, %p2689_p2 }
 0x6a9   : > { %p1899_p1 = por %p1898_p9, %p1897_p6 }
 0x6aa   : > { %p1895_p11 = pneg %p1894_p3 }
 0x6ab   : > { %p1901_p5 = por %p1900_p0, %p1899_p1 }
 0x6ad   : > { %p1902_p7 = pnand %p1901_p5, %p1895_p11 }
 0x6af   : > { %1905 = shalt.err (!%p1902_p7)
}
 0x6b0   : > { %1485 = dma.vmem_to_hbm [thread:$0]  (%p2689_p2), %s1092_s11, 128, %s2527_s30, %s1072_s23   ;;  %v1067_v28 = vcvt.f32.s32 %v1061_v25 }
 0x6b1   : > { %s630_s19 = scalar_lea.vmem [#allocation20], %s2459_s1  ;;  %s2690_s21 = sld [smem:[#allocation42_spill]] }
 0x6b2   : > { %s1105_s25 = sshll.u32 %s630_s19, 4  ;;  %v1068_v30 = vshll.u32 %v1067_v28, 16  ;;  %s1077_s30 = scalar_lea.sflag [#allocation21], %s2456_s10  ;;  %s2556_s25 = int_to_ptr.vmem [resolvable:$true] %s1105_s25 }
 0x6b3   : > { %s1906_s11 = scalar_lea.vmem %s2556_s25, 128  ;;  %s2032_s1 = smov [#allocation20]  }
 0x6b4   : > { %p1907_p10 = scmp.ne.s32.totalorder %s2556_s25, %s1906_s11  ;;  %s1910_s20 = sshll.u32 %s2032_s1, 4  ;;  %s1911_s20 = int_to_ptr.vmem [resolvable:$false] %s1910_s20 }
 0x6b5   : > { %s1912_s23 = scalar_lea.vmem %s1911_s20, 256  ;;  %p1913_p13 = scmp.lt.s32.totalorder %s2556_s25, %s1911_s20 }
 0x6b6   : > { %p1908_p4 = pnand %p1907_p10, %p2689_p2  ;;  %p1914_p8 = scmp.lt.s32.totalorder %s1912_s23, %s1906_s11 }
 0x6b7   : > { %s2554_s13 = scalar_lea.hbm %s2690_s21, %s1390_s5 }
 0x6b8   : > { %p1909_p12 = pneg %p1908_p4  ;;  %p1915_p3 = por %p1914_p8, %p1913_p13 }
 0x6ba   : > { %p1916_p11 = pnand %p1915_p3, %p1909_p12 }
 0x730   : > { %v1065_v29 = vpop.xlane.xlu0 %1064 }
 0x731   : > { %v1066_v31 = vcvt.f32.s32 %v1065_v29 }
 0x733   : > { %v1069_v32 = vadd.s32 %v1068_v30, %v1066_v31 }
 0x735   : > { %1070 = vst.msk [vmem:[%s630_s19] sm:$0xff] %vm635_vm3, %v1069_v32 }
 0x736   : > { %1919 = shalt.err (!%p1916_p11)
}
 0x737   : > { %s1920_s10 = scalar_lea.hbm %s2554_s13, 128  ;;  %s1924_s9 = scalar_lea.hbm %s2690_s21, 256 }
 0x738   : > { %p1921_p6 = scmp.ne.s32.totalorder %s2554_s13, %s1920_s10  ;;  %p1925_p0 = scmp.lt.u32.totalorder %s2554_s13, %s2690_s21 }
 0x739   : > { %p1926_p5 = scmp.lt.u32.totalorder %s1924_s9, %s1920_s10  ;;  %p1928_p10 = scmp.lt.u32.totalorder %s1920_s10, %s2554_s13 }
 0x73a   : > { %p1922_p9 = pnand %p1921_p6, %p2689_p2 }
 0x73b   : > { %p1927_p7 = por %p1926_p5, %p1925_p0 }
 0x73c   : > { %p1923_p1 = pneg %p1922_p9 }
 0x73d   : > { %p1929_p4 = por %p1928_p10, %p1927_p7 }
 0x73f   : > { %p1930_p12 = pnand %p1929_p4, %p1923_p1 }
 0x741   : > { %1933 = shalt.err (!%p1930_p12)
}
 0x742   : > { %1486 = dma.vmem_to_hbm [thread:$0]  (%p2689_p2), %s2556_s25, 128, %s2554_s13, %s1077_s30  }
 0x743 PF: > { %s2691_s28 = sld [smem:[#allocation29_spill]]  ;;  %s2692_s3 = sld [smem:[#allocation34_spill]] }
 0x744   : > { %p2694_p8 = scmp.ge.s32.totalorder %s2008_s18, 2 }
 0x749   : > { %s1117_s15 = sand.u32 1, %s2691_s28   ;;  %p2693_p13 = scmp.ne.s32.totalorder %s2692_s3, 0 }
 0x74a   : > { %s1118_s19 = scalar_lea.sflag [#allocation6], %s1117_s15 }
 0x74b   : > { %p1519_p3 = pnand %p2694_p8, %p2693_p13 }
 0x74d   : > { %1979 = dma.done.wait (!%p1519_p3), %s1118_s19, 128  }
 0x74e   : > { %1981 = vsyncadd (!%p1519_p3), %s1118_s19, 4294967168  ;;  %s1127_s16 = scalar_lea.sflag [#allocation21], %s1117_s15 }
 0x74f   : > { %1983 = dma.done.wait (!%p1519_p3), %s1127_s16, 128  }
 0x750   : > { %1985 = vsyncadd (!%p1519_p3), %s1127_s16, 4294967168  ;;  %s38_s18 = sadd.s32 1, %s2008_s18   ;;  %s2695_s27 = sld [smem:[#allocation30_spill]] }
 0x751   : > { %p35_p11 = scmp.ge.s32.totalorder %s38_s18, 4   ;;  %s2696_s15 = sld [smem:[#allocation37_spill]] }
 0x752   : > { %s2697_s25 = sld [smem:[#allocation35_spill]]  ;;  %s2698_s13 = smov %s1992_s14 }
 0x753   : > { %s2700_s16 = smov %s2004_s17  ;;  %37 = sbr.rel (!%p35_p11) target bundleno = 20 (0x14), region = 192 }
 0x756   : > { %s2699_s14 = smov %s2695_s27 }
 0x758   : > { %s2701_s17 = smov %s2697_s25 }
 0x75a   :  { %1132 = vsyncpa [#allocation5], 1 }
 0x75b   :  { %1134 = vsyncpa [#allocation5 + $0x1], 1 }
 0x75c   :  { %1135 = vsyncpa [#allocation8], 1 }
 0x75d   :  { %1136 = vsyncpa [#allocation11], 1 }
 0x75e   :  { %1137 = vsyncpa [#allocation14], 1 }
 0x75f   :  { %1139 = vsyncpa [#allocation14 + $0x1], 1 }
 0x760   :  { %1140 = vsyncpa [#allocation17], 1 }
 0x761   :  { %1142 = vsyncpa [#allocation17 + $0x1], 1 }
 0x762   :  { %1143 = vsyncpa [#allocation6], 1 }
 0x763   :  { %1145 = vsyncpa [#allocation6 + $0x1], 1 }
 0x764   :  { %1146 = vsyncpa [#allocation21], 1 }
 0x765   :  { %1148 = vsyncpa [#allocation21 + $0x1], 1 }

</bundles_post_ra>
